<compile_context>
chip_gen: v7x
topology: tpu7x:2x2x1
jax: 0.10.0
libtpu: 0.0.40
codegen_flags: <defaults>
</compile_context>

<pallas_src>
import functools

import jax
import jax.numpy as jnp
from jax.experimental import pallas as pl
from jax.experimental.pallas import tpu as pltpu

_LANE = 128
_SUB = 8


def _dice_kernel(y_ref, t_ref, num_ref, pt_ref, *,
                 d_total, tile_r, n_r_split, needs_mask):
    s = pl.program_id(0)          # TC-parallel row split
    r = pl.program_id(2)          # reduction steps within this split

    @pl.when(r == 0)
    def _init():
        num_ref[...] = jnp.zeros_like(num_ref)
        pt_ref[...] = jnp.zeros_like(pt_ref)

    # Elementwise hot path (HBM-streaming; hides under the DMA).
    x = y_ref[0].astype(jnp.float32)              # (tile_r, 128)
    t = t_ref[0].astype(jnp.float32)
    # sigmoid(x) = 0.5 * (tanh(x/2) + 1): one EUP transcendental per element.
    p = 0.5 * (jnp.tanh(0.5 * x) + 1.0)
    num_c = p * t
    pt_c = p + t

    if needs_mask:
        # Validity mask for the tail (row tile padding and/or D % 128 != 0).
        # jnp.where (not multiply) so OOB garbage / NaN cannot leak through.
        row0 = (s * n_r_split + r) * tile_r
        row_idx = jax.lax.broadcasted_iota(jnp.int32, (tile_r, _LANE), 0) + row0
        lane_idx = jax.lax.broadcasted_iota(jnp.int32, (tile_r, _LANE), 1)
        valid = row_idx * _LANE + lane_idx < d_total
        num_c = jnp.where(valid, num_c, 0.0)
        pt_c = jnp.where(valid, pt_c, 0.0)

    # Fold (tile_r, 128) -> (8, 128) with VPU adds only; accumulate straight
    # into the output blocks (VMEM-resident across the r axis).
    num_ref[0, 0] += jnp.sum(num_c.reshape(tile_r // _SUB, _SUB, _LANE), axis=0)
    pt_ref[0, 0] += jnp.sum(pt_c.reshape(tile_r // _SUB, _SUB, _LANE), axis=0)


def dice_coefficient_with_logits_pallas(y, y_true, epsilon=1e-6):
    """y, y_true: (B, ...) arrays (any trailing dims, float/int/bool dtypes).

    Returns the scalar mean dice coefficient (float32), matching
    DiceCoefficientWithLogits.forward.
    """
    B = y.shape[0]
    D = 1
    for s in y.shape[1:]:
        D *= s

    # Packed-sublane alignment for the narrower input dtype.
    min_itemsize = min(jnp.dtype(y.dtype).itemsize, jnp.dtype(y_true.dtype).itemsize)
    max_itemsize = max(jnp.dtype(y.dtype).itemsize, jnp.dtype(y_true.dtype).itemsize)
    sub_mult = max(_SUB, _SUB * (4 // max(1, min_itemsize)))

    rows = pl.cdiv(D, _LANE)                  # rows per sample in (rows, 128) view

    # ~1 MiB input blocks: ~1% off peak pipeline efficiency, but intermediates
    # stay small enough that the working set fits scoped VMEM on all chips.
    target_block_bytes = 1 * 1024 * 1024
    tile_target = max(
        sub_mult,
        (target_block_bytes // (_LANE * max_itemsize)) // sub_mult * sub_mult,
    )

    if rows >= sub_mult:
        tile_r = min(tile_target, (rows // sub_mult) * sub_mult)
        rows_arr = rows                       # no row padding; trailing block may be partial
    else:
        tile_r = sub_mult                     # tiny input: pad up to one aligned tile
        rows_arr = sub_mult

    n_r = pl.cdiv(rows_arr, tile_r)
    n_split = 2 if n_r >= 2 else 1            # row split for v7x dual TensorCores
    n_r_split = pl.cdiv(n_r, n_split)

    d_pad = rows_arr * _LANE
    needs_mask = (n_split * n_r_split * tile_r * _LANE) != D

    # ---- glue: flatten (+ tiny zero-pad only when D % 128 != 0) -------------
    y2 = y.reshape(B, D)
    t2 = y_true.reshape(B, D)
    if d_pad != D:
        pad = d_pad - D
        # Zero pad is safe for any dtype: padded elements are excluded by the
        # in-kernel mask, so they contribute nothing to either sum.
        y2 = jnp.pad(y2, ((0, 0), (0, pad)))
        t2 = jnp.pad(t2, ((0, 0), (0, pad)))
    y3 = y2.reshape(B, rows_arr, _LANE)
    t3 = t2.reshape(B, rows_arr, _LANE)

    def in_map(s, b, r):
        # Clamp so a fully-out-of-range split block re-reads the last valid
        # block (its contribution is zeroed by the mask).
        return (b, jnp.minimum(s * n_r_split + r, n_r - 1), 0)

    def out_map(s, b, r):
        return (s, b, 0, 0)

    kernel = functools.partial(
        _dice_kernel,
        d_total=D, tile_r=tile_r, n_r_split=n_r_split, needs_mask=needs_mask,
    )

    num_lanes, pt_lanes = pl.pallas_call(
        kernel,
        out_shape=(
            jax.ShapeDtypeStruct((n_split, B, _SUB, _LANE), jnp.float32),
            jax.ShapeDtypeStruct((n_split, B, _SUB, _LANE), jnp.float32),
        ),
        grid_spec=pltpu.PrefetchScalarGridSpec(
            num_scalar_prefetch=0,
            grid=(n_split, B, n_r_split),
            in_specs=[
                pl.BlockSpec((1, tile_r, _LANE), in_map),
                pl.BlockSpec((1, tile_r, _LANE), in_map),
            ],
            out_specs=[
                pl.BlockSpec((1, 1, _SUB, _LANE), out_map),
                pl.BlockSpec((1, 1, _SUB, _LANE), out_map),
            ],
        ),
        compiler_params=pltpu.CompilerParams(
            dimension_semantics=("parallel", "parallel", "arbitrary"),
            vmem_limit_bytes=32 * 1024 * 1024,
        ),
    )(y3, t3)

    # ---- tiny (fused) epilogue: lane reduce, hoisted eps/2x, batch mean -----
    num = jnp.sum(num_lanes, axis=(0, 2, 3))          # (B,)  sum p*t
    pt = jnp.sum(pt_lanes, axis=(0, 2, 3))            # (B,)  sum (p + t)
    dice = (2.0 * num) / (pt + D * epsilon)
    return jnp.mean(dice)


def _reference(y, y_true, epsilon=1e-6):
    B = y.shape[0]
    p = jax.nn.sigmoid(y.reshape(B, -1).astype(jnp.float32))
    t = y_true.reshape(B, -1).astype(jnp.float32)
    num = jnp.sum(2.0 * p * t, axis=1)
    den = jnp.sum(p + t + epsilon, axis=1)
    return jnp.mean(num / den)


if __name__ == "__main__":
    key = jax.random.PRNGKey(0)
    k1, k2 = jax.random.split(key)
    B, C, H, W = 2, 4, 16, 16
    y = jax.random.normal(k1, (B, C, H, W), dtype=jnp.float32)             # logits
    y_true = (jax.random.uniform(k2, (B, C, H, W)) > 0.5).astype(jnp.float32)

    out = dice_coefficient_with_logits_pallas(y, y_true)
    out = jax.block_until_ready(out)

    ref = _reference(y, y_true)
    assert out.shape == ()
    assert jnp.allclose(out, ref, atol=1e-5, rtol=1e-5), (out, ref)
    print("KERNEL_OK")
</pallas_src>

<mosaic_0001>
module attributes {stable_mosaic.version = 11 : i64} {
  func.func @_dice_kernel(%arg0: i32, %arg1: i32, %arg2: i32, %arg3: memref<1x8x128xf32, #tpu.memory_space<vmem>>, %arg4: memref<1x8x128xf32, #tpu.memory_space<vmem>>, %arg5: memref<1x1x8x128xf32, #tpu.memory_space<vmem>>, %arg6: memref<1x1x8x128xf32, #tpu.memory_space<vmem>>) attributes {dimension_semantics = [#tpu.dimension_semantics<parallel>, #tpu.dimension_semantics<parallel>, #tpu.dimension_semantics<arbitrary>], iteration_bounds = array<i64: 1, 2, 1>, scalar_prefetch = 0 : i64, scratch_operands = 0 : i64, tpu.core_type = #tpu.core_type<tc>, window_params = [{transform_indices = @transform_0, window_bounds = array<i64: 1, 8, 128>}, {transform_indices = @transform_1, window_bounds = array<i64: 1, 8, 128>}, {transform_indices = @transform_2, window_bounds = array<i64: 1, 1, 8, 128>}, {transform_indices = @transform_3, window_bounds = array<i64: 1, 1, 8, 128>}]} {
    %c0_i32 = arith.constant 0 : i32
    %0 = arith.cmpi eq, %arg2, %c0_i32 : i32
    %1 = arith.extui %0 : i1 to i32
    %c0_i32_0 = arith.constant 0 : i32
    %2 = arith.cmpi ne, %1, %c0_i32_0 : i32
    scf.if %2 {
      %cst_26 = arith.constant 0.000000e+00 : f32
      %32 = vector.broadcast %cst_26 : f32 to vector<1x1x8x128xf32>
      %c0_27 = arith.constant 0 : index
      %c0_28 = arith.constant 0 : index
      %c0_29 = arith.constant 0 : index
      %c0_30 = arith.constant 0 : index
      %33 = vector.load %arg5[%c0_27, %c0_28, %c0_29, %c0_30] : memref<1x1x8x128xf32, #tpu.memory_space<vmem>>, vector<1x1x8x128xf32>
      tpu.vector_store %arg5[%c0_27, %c0_28, %c0_29, %c0_30], %32 {strides = array<i32>} : memref<1x1x8x128xf32, #tpu.memory_space<vmem>>, vector<1x1x8x128xf32>,
      %cst_31 = arith.constant 0.000000e+00 : f32
      %34 = vector.broadcast %cst_31 : f32 to vector<1x1x8x128xf32>
      %c0_32 = arith.constant 0 : index
      %c0_33 = arith.constant 0 : index
      %c0_34 = arith.constant 0 : index
      %c0_35 = arith.constant 0 : index
      %35 = vector.load %arg6[%c0_32, %c0_33, %c0_34, %c0_35] : memref<1x1x8x128xf32, #tpu.memory_space<vmem>>, vector<1x1x8x128xf32>
      tpu.vector_store %arg6[%c0_32, %c0_33, %c0_34, %c0_35], %34 {strides = array<i32>} : memref<1x1x8x128xf32, #tpu.memory_space<vmem>>, vector<1x1x8x128xf32>,
    } else {
    }
    %c0 = arith.constant 0 : index
    %c0_1 = arith.constant 0 : index
    %c0_2 = arith.constant 0 : index
    %3 = vector.load %arg3[%c0, %c0_1, %c0_2] : memref<1x8x128xf32, #tpu.memory_space<vmem>>, vector<1x8x128xf32>
    %4 = vector.shape_cast %3 : vector<1x8x128xf32> to vector<8x128xf32>
    %c0_3 = arith.constant 0 : index
    %c0_4 = arith.constant 0 : index
    %c0_5 = arith.constant 0 : index
    %5 = vector.load %arg4[%c0_3, %c0_4, %c0_5] : memref<1x8x128xf32, #tpu.memory_space<vmem>>, vector<1x8x128xf32>
    %6 = vector.shape_cast %5 : vector<1x8x128xf32> to vector<8x128xf32>
    %cst = arith.constant 5.000000e-01 : f32
    %7 = vector.broadcast %cst : f32 to vector<8x128xf32>
    %8 = arith.mulf %7, %4 : vector<8x128xf32>
    %9 = math.tanh %8 : vector<8x128xf32>
    %cst_6 = arith.constant 1.000000e+00 : f32
    %10 = vector.broadcast %cst_6 : f32 to vector<8x128xf32>
    %11 = arith.addf %9, %10 : vector<8x128xf32>
    %cst_7 = arith.constant 5.000000e-01 : f32
    %12 = vector.broadcast %cst_7 : f32 to vector<8x128xf32>
    %13 = arith.mulf %12, %11 : vector<8x128xf32>
    %14 = arith.mulf %13, %6 : vector<8x128xf32>
    %15 = arith.addf %13, %6 : vector<8x128xf32>
    %c0_8 = arith.constant 0 : index
    %c0_9 = arith.constant 0 : index
    %c0_10 = arith.constant 0 : index
    %c0_11 = arith.constant 0 : index
    %16 = vector.load %arg5[%c0_8, %c0_9, %c0_10, %c0_11] : memref<1x1x8x128xf32, #tpu.memory_space<vmem>>, vector<1x1x8x128xf32>
    %17 = vector.shape_cast %16 : vector<1x1x8x128xf32> to vector<8x128xf32>
    %18 = vector.shape_cast %14 : vector<8x128xf32> to vector<1x8x128xf32>
    %cst_12 = arith.constant dense<0.000000e+00> : vector<8x128xf32>
    %19 = vector.multi_reduction <add>, %18, %cst_12 [0] : vector<1x8x128xf32> to vector<8x128xf32>
    %20 = arith.addf %17, %19 : vector<8x128xf32>
    %c0_13 = arith.constant 0 : index
    %c0_14 = arith.constant 0 : index
    %c0_15 = arith.constant 0 : index
    %c0_16 = arith.constant 0 : index
    %21 = vector.load %arg5[%c0_13, %c0_14, %c0_15, %c0_16] : memref<1x1x8x128xf32, #tpu.memory_space<vmem>>, vector<1x1x8x128xf32>
    %22 = vector.shape_cast %21 : vector<1x1x8x128xf32> to vector<8x128xf32>
    %23 = vector.shape_cast %20 : vector<8x128xf32> to vector<1x1x8x128xf32>
    tpu.vector_store %arg5[%c0_13, %c0_14, %c0_15, %c0_16], %23 {strides = array<i32>} : memref<1x1x8x128xf32, #tpu.memory_space<vmem>>, vector<1x1x8x128xf32>,
    %c0_17 = arith.constant 0 : index
    %c0_18 = arith.constant 0 : index
    %c0_19 = arith.constant 0 : index
    %c0_20 = arith.constant 0 : index
    %24 = vector.load %arg6[%c0_17, %c0_18, %c0_19, %c0_20] : memref<1x1x8x128xf32, #tpu.memory_space<vmem>>, vector<1x1x8x128xf32>
    %25 = vector.shape_cast %24 : vector<1x1x8x128xf32> to vector<8x128xf32>
    %26 = vector.shape_cast %15 : vector<8x128xf32> to vector<1x8x128xf32>
    %cst_21 = arith.constant dense<0.000000e+00> : vector<8x128xf32>
    %27 = vector.multi_reduction <add>, %26, %cst_21 [0] : vector<1x8x128xf32> to vector<8x128xf32>
    %28 = arith.addf %25, %27 : vector<8x128xf32>
    %c0_22 = arith.constant 0 : index
    %c0_23 = arith.constant 0 : index
    %c0_24 = arith.constant 0 : index
    %c0_25 = arith.constant 0 : index
    %29 = vector.load %arg6[%c0_22, %c0_23, %c0_24, %c0_25] : memref<1x1x8x128xf32, #tpu.memory_space<vmem>>, vector<1x1x8x128xf32>
    %30 = vector.shape_cast %29 : vector<1x1x8x128xf32> to vector<8x128xf32>
    %31 = vector.shape_cast %28 : vector<8x128xf32> to vector<1x1x8x128xf32>
    tpu.vector_store %arg6[%c0_22, %c0_23, %c0_24, %c0_25], %31 {strides = array<i32>} : memref<1x1x8x128xf32, #tpu.memory_space<vmem>>, vector<1x1x8x128xf32>,
    return
  }
  func.func @transform_0(%arg0: i32, %arg1: i32, %arg2: i32) -> (i32, i32, i32) {
    %c1_i32 = arith.constant 1 : i32
    %0 = arith.muli %arg0, %c1_i32 : i32
    %1 = arith.addi %0, %arg2 : i32
    %c0_i32 = arith.constant 0 : i32
    %2 = arith.minsi %1, %c0_i32 : i32
    %c0_i32_0 = arith.constant 0 : i32
    %c0_i32_1 = arith.constant 0 : i32
    return %arg1, %2, %c0_i32_0 : i32, i32, i32
  }
  func.func @transform_1(%arg0: i32, %arg1: i32, %arg2: i32) -> (i32, i32, i32) {
    %c1_i32 = arith.constant 1 : i32
    %0 = arith.muli %arg0, %c1_i32 : i32
    %1 = arith.addi %0, %arg2 : i32
    %c0_i32 = arith.constant 0 : i32
    %2 = arith.minsi %1, %c0_i32 : i32
    %c0_i32_0 = arith.constant 0 : i32
    %c0_i32_1 = arith.constant 0 : i32
    return %arg1, %2, %c0_i32_0 : i32, i32, i32
  }
  func.func @transform_2(%arg0: i32, %arg1: i32, %arg2: i32) -> (i32, i32, i32, i32) {
    %c0_i32 = arith.constant 0 : i32
    %c0_i32_0 = arith.constant 0 : i32
    %c0_i32_1 = arith.constant 0 : i32
    return %arg0, %arg1, %c0_i32, %c0_i32_0 : i32, i32, i32, i32
  }
  func.func @transform_3(%arg0: i32, %arg1: i32, %arg2: i32) -> (i32, i32, i32, i32) {
    %c0_i32 = arith.constant 0 : i32
    %c0_i32_0 = arith.constant 0 : i32
    %c0_i32_1 = arith.constant 0 : i32
    return %arg0, %arg1, %c0_i32, %c0_i32_0 : i32, i32, i32, i32
  }
}

</mosaic_0001>

<bundles_post_ra>
// kernel: tpu_custom_call.1
= control target key start
LH: loop header
LB: loop body
LE: loop exit
PB: predicated region body
PF: predicated region fallthrough
CT: control target
= control target key end

     0   :  { %9 = vsyncpa [#allocation3], 0  ;;  %s1034_s0 = inlined_call_operand.hbm [shape: f32[2,8,128], index: 0, kind: input, shape index: {}]   ;;  %s1035_s1 = inlined_call_operand.hbm [shape: f32[2,8,128], index: 1, kind: input, shape index: {}]   ;;  %s1036_s2 = inlined_call_operand.hbm [shape: f32[1,2,8,128], index: 2, kind: output, shape index: {0}]   ;;  %s1037_s3 = inlined_call_operand.hbm [shape: f32[1,2,8,128], index: 3, kind: output, shape index: {1}]  }
   0x1   :  { %11 = vsyncpa [#allocation3 + $0x1], 0 }
   0x2   :  { %12 = vsyncpa [#allocation6], 0 }
   0x3   :  { %14 = vsyncpa [#allocation6 + $0x1], 0 }
   0x4   :  { %15 = vsyncpa [#allocation4], 0 }
   0x5   :  { %17 = vsyncpa [#allocation4 + $0x1], 0 }
   0x6   :  { %18 = vsyncpa [#allocation9], 0 }
   0x7   :  { %20 = vsyncpa [#allocation9 + $0x1], 0  ;;  %s785_s12 = smov 0   ;;  %s787_s13 = smov 0  }
   0x8   :  { %s789_s14 = smov 0   ;;  %s791_s15 = smov 0  }
   0x9   :  { %s793_s16 = smov 0   ;;  %s795_s17 = smov 0  }
   0xa LB: > { %s487_s18 = sadd.s32 4294967295, %s759_s17   ;;  %s488_s19 = sadd.s32 4294967294, %s759_s17   ;;  %s759_s17 = sphi %s795_s17, %s26_s17   ;;  %s755_s16 = sphi %s793_s16, %s1057_s16   ;;  %s751_s15 = sphi %s791_s15, %s1056_s15   ;;  %s747_s14 = sphi %s789_s14, %s1055_s14   ;;  %s743_s13 = sphi %s787_s13, %s1054_s13   ;;  %s739_s12 = sphi %s785_s12, %s1053_s12  }
   0xb   : > { %s41_s20 = sadd.s32 1, %s755_s16  ;;  %s60_s21 = sadd.s32 1, %s747_s14 }
   0xc   : > { %p43_p0 = scmp.ge.s32.totalorder %s41_s20, 2  ;;  %p67_p1 = scmp.ne.s32.totalorder %s747_s14, %s743_s13 }
   0xd   : > { %p68_p2 = scmp.eq.s32.totalorder %s759_s17, 0  ;;  %p73_p3 = scmp.ne.s32.totalorder %s743_s13, %s739_s12 }
   0xe   : > { %s1059_s20 = smov (%p43_p0, %s41_s20), 0  ;;  %p74_p5 = scmp.eq.s32.totalorder %s487_s18, 0 }
   0xf   : > { %p826_p4 = por %p68_p2, %p67_p1  ;;  %s55_s23 = ssub.s32 %s755_s16, %s1059_s20 }
  0x10   : > { %p133_p6 = scmp.eq.s32.totalorder %s487_s18, 1  ;;  %p58_p7 = scmp.eq.s32.totalorder %s55_s23, 0 }
  0x11   : > { %p832_p8 = por %p74_p5, %p73_p3  ;;  %p139_p10 = scmp.eq.s32.totalorder %s488_s19, 1 }
  0x12   : > { %p836_p9 = por %p133_p6, %p67_p1  ;;  %p528_p13 = scmp.lt.s32.totalorder %s759_s17, 2 }
  0x13   : > { %s1041_s24 = scalar_select %p832_p8, 1, 0 }
  0x14   : > { %s1042_s25 = scalar_select %p836_p9, 1, 0 }
  0x15   : > { %s841_s26 = scalar_select %p58_p7, %s747_s14, %s60_s21  }
  0x16   : > { %p843_p11 = por %p139_p10, %p73_p3  ;;  %s850_s28 = sand.u32 1, %s747_s14  }
  0x17   : > { %s491_s29 = sshll.u32 %s850_s28, 3  ;;  %s492_s30 = sshll.u32 %s755_s16, 7 }
  0x18   : > { %s1043_s27 = scalar_select %p843_p11, 1, 0 }
  0x19   : > { %s859_s6 = scalar_lea.hbm %s1034_s0, %s492_s30  ;;  %s191_s7 = scalar_lea.vmem [#allocation2], %s491_s29 }
  0x1a   : > { %s202_s8 = sshll.u32 %s191_s7, 4  ;;  %p867_p0 = pnand %p528_p13, %p826_p4  ;;  %s863_s8 = int_to_ptr.vmem [resolvable:$true] %s202_s8 }
  0x1b   : > { %s188_s10 = scalar_lea.sflag [#allocation3], %s850_s28  ;;  %s581_s11 = scalar_lea.hbm %s859_s6, 128 }
  0x1c   : > { %p582_p3 = scmp.ne.s32.totalorder %s859_s6, %s581_s11  ;;  %p583_p5 = pneg %p867_p0 }
  0x1d   : > { %s586_s21 = scalar_lea.hbm %s1034_s0, 256  ;;  %p587_p4 = scmp.lt.u32.totalorder %s859_s6, %s1034_s0 }
  0x1e   : > { %p584_p6 = pnand %p583_p5, %p582_p3  ;;  %p588_p10 = scmp.lt.u32.totalorder %s586_s21, %s581_s11 }
  0x1f   : > { %p590_p12 = scmp.lt.u32.totalorder %s581_s11, %s859_s6 }
  0x20   : > { %p585_p7 = pneg %p584_p6  ;;  %p589_p13 = por %p588_p10, %p587_p4 }
  0x22   : > { %p591_p1 = por %p590_p12, %p589_p13 }
  0x24   : > { %p592_p2 = pnand %p591_p1, %p585_p7 }
  0x26   : > { %595 = shalt.err (!%p592_p2)
}
  0x27   : > { %s596_s4 = scalar_lea.vmem %s863_s8, 128  ;;  %s761_s5 = smov [#allocation2]  }
  0x28   : > { %p597_p3 = scmp.ne.s32.totalorder %s863_s8, %s596_s4  ;;  %s601_s7 = sshll.u32 %s761_s5, 4  ;;  %s602_s7 = int_to_ptr.vmem [resolvable:$false] %s601_s7 }
  0x29   : > { %s603_s18 = scalar_lea.vmem %s602_s7, 256  ;;  %p604_p9 = scmp.lt.s32.totalorder %s863_s8, %s602_s7 }
  0x2a   : > { %p599_p6 = pnand %p597_p3, %p583_p5  ;;  %p605_p4 = scmp.lt.s32.totalorder %s603_s18, %s596_s4 }
  0x2c   : > { %p600_p11 = pneg %p599_p6  ;;  %p606_p10 = por %p605_p4, %p604_p9 }
  0x2e   : > { %p607_p12 = pnand %p606_p10, %p600_p11 }
  0x30   : > { %610 = shalt.err (!%p607_p12)
}
  0x31   : > { %517 = dma.hbm_to_vmem [thread:$0]  (!%p867_p0), %s859_s6, 128, %s863_s8, %s188_s10  }
  0x32   : > { %p1045_p1 = scmp.lt.s32.totalorder %s759_s17, 3  ;;  %p1046_p2 = scmp.ge.s32.totalorder %s759_s17, 1 }
  0x33   : > { %s912_s22 = scalar_lea.hbm %s1035_s1, %s492_s30  ;;  %s213_s23 = scalar_lea.vmem [#allocation5], %s491_s29 }
  0x34   : > { %p903_p7 = pnand %p1046_p2, %p1045_p1  ;;  %s224_s4 = sshll.u32 %s213_s23, 4  ;;  %s225_s4 = int_to_ptr.vmem [resolvable:$true] %s224_s4 }
  0x35   : > { %s210_s6 = scalar_lea.sflag [#allocation6], %s850_s28  ;;  %s611_s8 = scalar_lea.hbm %s912_s22, 128 }
  0x36   : > { %s1047_s11 = scalar_select %p903_p7, 1, 0 }
  0x37   : > { %p612_p9 = scmp.ne.s32.totalorder %s912_s22, %s611_s8  ;;  %s616_s30 = scalar_lea.hbm %s1035_s1, 256 }
  0x38   : > { %p617_p3 = scmp.lt.u32.totalorder %s912_s22, %s1035_s1  ;;  %p618_p6 = scmp.lt.u32.totalorder %s616_s30, %s611_s8 }
  0x39   : > { %p614_p11 = pnand %p612_p9, %p583_p5  ;;  %p620_p10 = scmp.lt.u32.totalorder %s611_s8, %s912_s22 }
  0x3a   : > { %p619_p4 = por %p618_p6, %p617_p3 }
  0x3b   : > { %p615_p13 = pneg %p614_p11 }
  0x3c   : > { %p621_p12 = por %p620_p10, %p619_p4 }
  0x3e   : > { %p622_p1 = pnand %p621_p12, %p615_p13 }
  0x40   : > { %625 = shalt.err (!%p622_p1)
}
  0x41   : > { %s626_s28 = scalar_lea.vmem %s225_s4, 128  ;;  %s762_s29 = smov [#allocation5]  }
  0x42   : > { %p627_p2 = scmp.ne.s32.totalorder %s225_s4, %s626_s28  ;;  %s631_s19 = sshll.u32 %s762_s29, 4  ;;  %s632_s19 = int_to_ptr.vmem [resolvable:$false] %s631_s19 }
  0x43   : > { %s633_s21 = scalar_lea.vmem %s632_s19, 256  ;;  %p634_p8 = scmp.lt.s32.totalorder %s225_s4, %s632_s19 }
  0x44   : > { %p629_p9 = pnand %p627_p2, %p583_p5  ;;  %p635_p7 = scmp.lt.s32.totalorder %s633_s21, %s626_s28 }
  0x46   : > { %p630_p11 = pneg %p629_p9  ;;  %p636_p3 = por %p635_p7, %p634_p8 }
  0x48   : > { %p637_p6 = pnand %p636_p3, %p630_p11 }
  0x4a   : > { %640 = shalt.err (!%p637_p6)
}
  0x4b   : > { %520 = dma.hbm_to_vmem [thread:$0]  (!%p867_p0), %s912_s22, 128, %s225_s4, %s210_s6  }
  0x4c   : > { %p1048_p13 = scmp.ne.s32.totalorder %s1047_s11, 0 }
  0x4d   : > { %s939_s23 = sand.u32 (!%p1048_p13), 1, %s743_s13   ;;  %p1049_p5 = scmp.ne.s32.totalorder (!%p1048_p13), %s1041_s24, 0 }
  0x4e   : > { %233 = sbr.rel (%p1048_p13) target bundleno = 145 (0x91), region = 28  ;;  %s496_s8 = sshll.u32 (!%p1048_p13), %s939_s23, 3 }
  0x4f   : > { %s236_s10 = scalar_lea.sflag (!%p1048_p13), [#allocation3], %s939_s23  ;;  %s239_s5 = scalar_lea.vmem (!%p1048_p13), [#allocation2], %s496_s8 }
  0x55   : > { %722 = dma.done.wait (%p1049_p5), %s236_s10, 128  }
  0x56   : > { %724 = vsyncadd (%p1049_p5), %s236_s10, 4294967168  ;;  %s245_s9 = scalar_lea.sflag [#allocation6], %s939_s23  ;;  %s248_s22 = scalar_lea.vmem [#allocation5], %s496_s8 }
  0x57   : > { %726 = dma.done.wait (%p1049_p5), %s245_s9, 128  }
  0x58   : > { %728 = vsyncadd (%p1049_p5), %s245_s9, 4294967168  ;;  %v293_v0 = vld [vmem:[%s239_s5] sm:$0xff]  ;;  %v294_v4 = vld [vmem:[%s248_s22] sm:$0xff]  ;;  %s502_s11 = sshll.u32 %s751_s15, 7  ;;  %s273_s4 = scalar_lea.vmem [#allocation7], %s496_s8 }
  0x59   : > { %v295_v1 = vmul.f32 0.5, %v293_v0  ;;  %s330_s6 = sshll.u32 %s273_s4, 4  ;;  %s280_s30 = scalar_lea.vmem [#allocation8], %s496_s8  ;;  %s958_s6 = int_to_ptr.vmem [resolvable:$true] %s330_s6 }
  0x5a   : > { %s345_s7 = sshll.u32 %s280_s30, 4  ;;  %s956_s28 = scalar_lea.hbm %s1036_s2, %s502_s11  ;;  %s965_s7 = int_to_ptr.vmem [resolvable:$true] %s345_s7 }
  0x5b   : > { %579 = vtanh.f32 %v295_v1  ;;  %s963_s15 = scalar_lea.hbm %s1037_s3, %s502_s11  ;;  %s310_s21 = scalar_lea.sflag [#allocation4], %s939_s23 }
  0x5c   : > { %s641_s8 = scalar_lea.vmem %s958_s6, 128  ;;  %p1050_p0 = scmp.ne.s32.totalorder %s1042_s25, 0 }
  0x5d   : > { %p642_p8 = scmp.ne.s32.totalorder %s958_s6, %s641_s8  ;;  %s763_s10 = smov [#allocation7]  }
  0x5e   : > { %s645_s5 = sshll.u32 %s763_s10, 4  ;;  %s646_s5 = int_to_ptr.vmem [resolvable:$false] %s645_s5 }
  0x5f   : > { %p643_p7 = pnand %p642_p8, %p1050_p0  ;;  %s647_s9 = scalar_lea.vmem %s646_s5, 256 }
  0x60   : > { %p648_p10 = scmp.lt.s32.totalorder %s958_s6, %s646_s5  ;;  %p649_p12 = scmp.lt.s32.totalorder %s647_s9, %s641_s8 }
  0x61   : > { %p644_p4 = pneg %p643_p7 }
  0x62   : > { %p650_p1 = por %p649_p12, %p648_p10 }
  0x64   : > { %p651_p2 = pnand %p650_p1, %p644_p4 }
  0x65   : > { %v580_v2 = vpop.eup %579 }
  0x66   : > { %v297_v3 = vadd.f32 1.0, %v580_v2 }
  0x68   : > { %v298_v5 = vmul.f32 0.5, %v297_v3 }
  0x6a   : > { %v299_v6 = vmul.f32 %v298_v5, %v294_v4  ;;  %v300_v7 = vadd.f32 %v298_v5, %v294_v4 }
  0x6c   : > { %304 = vst [vmem:[%s273_s4] sm:$0xff] %v299_v6  ;;  %308 = vst [vmem:[%s280_s30] sm:$0xff] %v300_v7 }
  0x6d   : > { %654 = shalt.err (!%p651_p2)
}
  0x6e   : > { %s655_s22 = scalar_lea.hbm %s956_s28, 128  ;;  %s659_s30 = scalar_lea.hbm %s1036_s2, 256 }
  0x6f   : > { %p656_p9 = scmp.ne.s32.totalorder %s956_s28, %s655_s22  ;;  %p660_p6 = scmp.lt.u32.totalorder %s956_s28, %s1036_s2 }
  0x70   : > { %p661_p13 = scmp.lt.u32.totalorder %s659_s30, %s655_s22  ;;  %p663_p8 = scmp.lt.u32.totalorder %s655_s22, %s956_s28 }
  0x71   : > { %p657_p11 = pnand %p656_p9, %p1050_p0 }
  0x72   : > { %p662_p5 = por %p661_p13, %p660_p6 }
  0x73   : > { %p658_p3 = pneg %p657_p11 }
  0x74   : > { %p664_p7 = por %p663_p8, %p662_p5 }
  0x76   : > { %p665_p4 = pnand %p664_p7, %p658_p3 }
  0x78   : > { %668 = shalt.err (!%p665_p4)
}
  0x79   : > { %510 = dma.vmem_to_hbm [thread:$0]  (%p1050_p0), %s958_s6, 128, %s956_s28, %s310_s21  }
  0x7a   : > { %s315_s29 = scalar_lea.sflag [#allocation9], %s939_s23  ;;  %s669_s19 = scalar_lea.vmem %s965_s7, 128 }
  0x7b   : > { %p670_p10 = scmp.ne.s32.totalorder %s965_s7, %s669_s19  ;;  %s764_s8 = smov [#allocation8]  }
  0x7c   : > { %s673_s10 = sshll.u32 %s764_s8, 4  ;;  %s674_s10 = int_to_ptr.vmem [resolvable:$false] %s673_s10 }
  0x7d   : > { %p671_p12 = pnand %p670_p10, %p1050_p0  ;;  %s675_s5 = scalar_lea.vmem %s674_s10, 256 }
  0x7e   : > { %p676_p2 = scmp.lt.s32.totalorder %s965_s7, %s674_s10  ;;  %p677_p9 = scmp.lt.s32.totalorder %s675_s5, %s669_s19 }
  0x7f   : > { %p672_p1 = pneg %p671_p12 }
  0x80   : > { %p678_p11 = por %p677_p9, %p676_p2 }
  0x82   : > { %p679_p3 = pnand %p678_p11, %p672_p1 }
  0x84   : > { %682 = shalt.err (!%p679_p3)
}
  0x85   : > { %s683_s23 = scalar_lea.hbm %s963_s15, 128  ;;  %s687_s21 = scalar_lea.hbm %s1037_s3, 256 }
  0x86   : > { %p684_p6 = scmp.ne.s32.totalorder %s963_s15, %s683_s23  ;;  %p688_p8 = scmp.lt.u32.totalorder %s963_s15, %s1037_s3 }
  0x87   : > { %p689_p7 = scmp.lt.u32.totalorder %s687_s21, %s683_s23  ;;  %p691_p10 = scmp.lt.u32.totalorder %s683_s23, %s963_s15 }
  0x88   : > { %p685_p13 = pnand %p684_p6, %p1050_p0 }
  0x89   : > { %p690_p4 = por %p689_p7, %p688_p8 }
  0x8a   : > { %p686_p5 = pneg %p685_p13 }
  0x8b   : > { %p692_p12 = por %p691_p10, %p690_p4 }
  0x8d   : > { %p693_p1 = pnand %p692_p12, %p686_p5 }
  0x8f   : > { %696 = shalt.err (!%p693_p1)
}
  0x90   : > { %511 = dma.vmem_to_hbm [thread:$0]  (%p1050_p0), %s965_s7, 128, %s963_s15, %s315_s29  }
  0x91 PF: > { %s357_s11 = sand.u32 1, %s739_s12   ;;  %p1051_p2 = scmp.ne.s32.totalorder %s1043_s27, 0 }
  0x92   : > { %p1052_p9 = scmp.ge.s32.totalorder %s759_s17, 2  ;;  %s358_s4 = scalar_lea.sflag [#allocation4], %s357_s11 }
  0x94   : > { %p522_p11 = pnand %p1052_p9, %p1051_p2 }
  0x96   : > { %730 = dma.done.wait (!%p522_p11), %s358_s4, 128  }
  0x97   : > { %732 = vsyncadd (!%p522_p11), %s358_s4, 4294967168  ;;  %s367_s30 = scalar_lea.sflag [#allocation9], %s357_s11 }
  0x98   : > { %734 = dma.done.wait (!%p522_p11), %s367_s30, 128  }
  0x99   : > { %736 = vsyncadd (!%p522_p11), %s367_s30, 4294967168  ;;  %s26_s17 = sadd.s32 1, %s759_s17   ;;  %s1053_s12 = smov %s743_s13 }
  0x9a   : > { %p23_p3 = scmp.ge.s32.totalorder %s26_s17, 4   ;;  %s1054_s13 = smov %s747_s14 }
  0x9b   : > { %s1055_s14 = smov %s841_s26  ;;  %s1056_s15 = smov %s755_s16 }
  0x9c   : > { %s1057_s16 = smov %s1059_s20  ;;  %25 = sbr.rel (!%p23_p3) target bundleno = 10 (0xa), region = 107 }
  0xa3   :  { %372 = vsyncpa [#allocation3], 1 }
  0xa4   :  { %374 = vsyncpa [#allocation3 + $0x1], 1 }
  0xa5   :  { %375 = vsyncpa [#allocation6], 1 }
  0xa6   :  { %377 = vsyncpa [#allocation6 + $0x1], 1 }
  0xa7   :  { %378 = vsyncpa [#allocation4], 1 }
  0xa8   :  { %380 = vsyncpa [#allocation4 + $0x1], 1 }
  0xa9   :  { %381 = vsyncpa [#allocation9], 1 }
  0xaa   :  { %383 = vsyncpa [#allocation9 + $0x1], 1 }

</bundles_post_ra>
